<compile_context>
chip_gen: v7x
topology: tpu7x:2x2x1
jax: 0.10.0
libtpu: 0.0.40
codegen_flags: <defaults>
</compile_context>

<pallas_src>
import functools

import jax
import jax.numpy as jnp
from jax.experimental import pallas as pl
from jax.experimental.pallas import tpu as pltpu


def _round_up(x, n):
    return ((x + n - 1) // n) * n


# --------------------------------------------------------------------------------------
# Kernel
# --------------------------------------------------------------------------------------
def _csc_kernel(z_ref, w1_ref, w2_ref, w3_ref, bias_ref, o_ref,
                *, h1_pad, h2_pad, c_pad, c_store):
    # ---- fc1 (bn1 scale pre-folded into w1 columns) + shift + relu (lane-dense) ----
    x = jnp.dot(z_ref[...], w1_ref[...], preferred_element_type=jnp.float32)
    x = jnp.maximum(x + bias_ref[0:1, :h1_pad], 0.0)
    # dropout: identity in eval mode

    # ---- fc2 (bn2 scale pre-folded into w2 columns, h2 lane-padded) + shift + relu ----
    x = jnp.dot(x, w2_ref[...], preferred_element_type=jnp.float32)
    x = jnp.maximum(x + bias_ref[1:2, :h2_pad], 0.0)
    # dropout: identity in eval mode

    # ---- fc3: GEMM + bias at lane-dense c_pad; only the store is narrowed to c_store ----
    out = jnp.dot(x, w3_ref[...], preferred_element_type=jnp.float32) + bias_ref[2:3, :c_pad]
    o_ref[...] = out[:, :c_store].astype(o_ref.dtype)


# --------------------------------------------------------------------------------------
# One-time parameter preparation (init / load time)
# --------------------------------------------------------------------------------------
def prepare_csc_params(params, *, eps=1e-5):
    """Transpose to (in, out), fold BatchNorm(eval) scale into weight columns, fold
    (bias - mean) * scale + beta into per-feature shifts, pad hidden/class dims to lane
    multiples, and pack shift1/shift2/b3 into one lane-aligned (8, 128k) tile."""
    w1 = jnp.asarray(params["w1"], jnp.float32)   # (h1, m)
    w2 = jnp.asarray(params["w2"], jnp.float32)   # (h2, h1)
    w3 = jnp.asarray(params["w3"], jnp.float32)   # (c, h2)
    h1, m = w1.shape
    h2 = w2.shape[0]
    c = w3.shape[0]

    h1_pad = _round_up(h1, 128)
    h2_pad = _round_up(h2, 128)
    c_pad = _round_up(c, 128)
    c_store = _round_up(c, 8)                      # narrow output store width (8 lanes for c=2)
    lane_w = max(h1_pad, h2_pad, c_pad)

    def fold(b, gamma, beta, mean, var):
        scale = jnp.asarray(gamma, jnp.float32) / jnp.sqrt(jnp.asarray(var, jnp.float32) + eps)
        shift = (jnp.asarray(b, jnp.float32) - jnp.asarray(mean, jnp.float32)) * scale \
            + jnp.asarray(beta, jnp.float32)
        return scale, shift

    s1, sh1 = fold(params["b1"], params["bn1_gamma"], params["bn1_beta"],
                   params["bn1_mean"], params["bn1_var"])
    s2, sh2 = fold(params["b2"], params["bn2_gamma"], params["bn2_beta"],
                   params["bn2_mean"], params["bn2_var"])

    # Zero-padded, scale-folded (in, out) weights. Padded columns/rows are zero, padded shift
    # lanes are zero -> relu(0)=0 and zero rows contribute nothing downstream (exact).
    w1_t = jnp.zeros((m, h1_pad), jnp.float32).at[:, :h1].set(w1.T * s1[None, :])
    w2_t = jnp.zeros((h1_pad, h2_pad), jnp.float32).at[:h1, :h2].set(w2.T * s2[None, :])
    w3_t = jnp.zeros((h2_pad, c_pad), jnp.float32).at[:h2, :c].set(w3.T)

    bias = jnp.zeros((8, lane_w), jnp.float32)
    bias = bias.at[0, :h1].set(sh1)
    bias = bias.at[1, :h2].set(sh2)
    bias = bias.at[2, :c].set(jnp.asarray(params["b3"], jnp.float32))

    prepared = {
        "w1": w1_t, "w2": w2_t, "w3": w3_t, "bias": bias,
        "dims": (m, h1, h2, c, h1_pad, h2_pad, c_pad, c_store, lane_w),
    }
    jax.block_until_ready((prepared["w1"], prepared["w2"], prepared["w3"], prepared["bias"]))
    return prepared


# --------------------------------------------------------------------------------------
# Forward wrappers
# --------------------------------------------------------------------------------------
def _pick_batch_tile(B):
    """Rows per grid step: multiple of 8, <= 1024, and >= 2 steps when B > 256 (v7x megacore)."""
    b8 = _round_up(max(B, 1), 8)
    if b8 <= 256:
        return b8                                   # single step; launch overhead dominates anyway
    n_steps = max(2, pl.cdiv(b8, 1024))
    return _round_up(pl.cdiv(b8, n_steps), 8)


def _xla_forward_prepared(z, prepared):
    """Small-batch fast path: plain XLA forward from the same prepared (folded) params."""
    m, h1, h2, c, h1_pad, h2_pad, c_pad, c_store, lane_w = prepared["dims"]
    bias = prepared["bias"]
    x = jnp.maximum(z.astype(jnp.float32) @ prepared["w1"] + bias[0, :h1_pad], 0.0)
    x = jnp.maximum(x @ prepared["w2"] + bias[1, :h2_pad], 0.0)
    out = x @ prepared["w3"] + bias[2, :c_pad]
    return out[:, :c]


def cross_subject_classifier_forward(z, prepared, *, force_pallas=False):
    """z: (B, m) float array; prepared: output of prepare_csc_params()."""
    m, h1, h2, c, h1_pad, h2_pad, c_pad, c_store, lane_w = prepared["dims"]
    B = z.shape[0]
    assert z.shape[1] == m

    if not force_pallas and B <= 256:
        # Latency-bound regime with grid=1: XLA's fused GEMM path is at least as fast.
        return _xla_forward_prepared(z, prepared)

    z_p = z if z.dtype == jnp.float32 else z.astype(jnp.float32)
    tb = _pick_batch_tile(B)
    grid_b = pl.cdiv(B, tb)                         # final block may be partial; no host-side pad

    flops = 2 * B * (m * h1_pad + h1_pad * h2_pad + h2_pad * c_pad)
    bytes_accessed = (B * (m + c_store)
                      + m * h1_pad + h1_pad * h2_pad + h2_pad * c_pad + 8 * lane_w) * 4
    cost = pl.CostEstimate(flops=flops, transcendentals=0, bytes_accessed=bytes_accessed)

    kernel = functools.partial(_csc_kernel, h1_pad=h1_pad, h2_pad=h2_pad,
                               c_pad=c_pad, c_store=c_store)
    out = pl.pallas_call(
        kernel,
        out_shape=jax.ShapeDtypeStruct((B, c_store), jnp.float32),
        grid=(grid_b,),
        in_specs=[
            pl.BlockSpec((tb, m), lambda i: (i, 0)),             # z: tiled over batch
            pl.BlockSpec((m, h1_pad), lambda i: (0, 0)),         # w1 (scale-folded), VMEM resident
            pl.BlockSpec((h1_pad, h2_pad), lambda i: (0, 0)),    # w2 (scale-folded, padded)
            pl.BlockSpec((h2_pad, c_pad), lambda i: (0, 0)),     # w3 (lane-padded)
            pl.BlockSpec((8, lane_w), lambda i: (0, 0)),         # packed shift1/shift2/b3
        ],
        out_specs=pl.BlockSpec((tb, c_store), lambda i: (i, 0)), # narrow (8-lane) output store
        compiler_params=pltpu.CompilerParams(
            dimension_semantics=("parallel",)),
        cost_estimate=cost,
    )(z_p, prepared["w1"], prepared["w2"], prepared["w3"], prepared["bias"])
    return out[:, :c]


# --------------------------------------------------------------------------------------
# Pure-JAX reference (from raw PyTorch-convention params) for validation
# --------------------------------------------------------------------------------------
def _reference_forward(z, params, eps=1e-5):
    def bn(x, g, b, mu, v):
        return (x - mu) / jnp.sqrt(v + eps) * g + b
    x = z @ params["w1"].T + params["b1"]
    x = jax.nn.relu(bn(x, params["bn1_gamma"], params["bn1_beta"],
                       params["bn1_mean"], params["bn1_var"]))
    x = x @ params["w2"].T + params["b2"]
    x = jax.nn.relu(bn(x, params["bn2_gamma"], params["bn2_beta"],
                       params["bn2_mean"], params["bn2_var"]))
    return x @ params["w3"].T + params["b3"]


if __name__ == "__main__":
    m = 32
    hidden1, hidden2, num_classes = 128, 64, 2

    key = jax.random.PRNGKey(0)
    ks = jax.random.split(key, 14)

    params = {
        "w1": jax.random.normal(ks[0], (hidden1, m), jnp.float32) * 0.05,
        "b1": jax.random.normal(ks[1], (hidden1,), jnp.float32) * 0.05,
        "bn1_gamma": 1.0 + 0.1 * jax.random.normal(ks[2], (hidden1,), jnp.float32),
        "bn1_beta": 0.1 * jax.random.normal(ks[3], (hidden1,), jnp.float32),
        "bn1_mean": 0.1 * jax.random.normal(ks[4], (hidden1,), jnp.float32),
        "bn1_var": jnp.abs(1.0 + 0.1 * jax.random.normal(ks[5], (hidden1,), jnp.float32)),
        "w2": jax.random.normal(ks[6], (hidden2, hidden1), jnp.float32) * 0.05,
        "b2": jax.random.normal(ks[7], (hidden2,), jnp.float32) * 0.05,
        "bn2_gamma": 1.0 + 0.1 * jax.random.normal(ks[8], (hidden2,), jnp.float32),
        "bn2_beta": 0.1 * jax.random.normal(ks[9], (hidden2,), jnp.float32),
        "bn2_mean": 0.1 * jax.random.normal(ks[10], (hidden2,), jnp.float32),
        "bn2_var": jnp.abs(1.0 + 0.1 * jax.random.normal(ks[11], (hidden2,), jnp.float32)),
        "w3": jax.random.normal(ks[12], (num_classes, hidden2), jnp.float32) * 0.05,
        "b3": jax.random.normal(ks[13], (num_classes,), jnp.float32) * 0.05,
    }

    # One-time parameter preparation (would live at model init / load time).
    prepared = prepare_csc_params(params)

    # 1) Small batch, Pallas kernel forced (single grid step).
    z_small = jax.random.normal(jax.random.PRNGKey(42), (8, m), jnp.float32)
    out_small = jax.block_until_ready(
        cross_subject_classifier_forward(z_small, prepared, force_pallas=True))
    ref_small = _reference_forward(z_small, params)
    assert out_small.shape == (8, num_classes)
    assert jnp.allclose(out_small, ref_small, atol=1e-4, rtol=1e-4), "small-batch mismatch"

    # 2) Larger batch, not a multiple of the tile: multi-step grid + partial final block,
    #    routed through the auto dispatch (Pallas path for B > 256), no host-side pad.
    z_big = jax.random.normal(jax.random.PRNGKey(7), (300, m), jnp.float32)
    out_big = jax.block_until_ready(cross_subject_classifier_forward(z_big, prepared))
    ref_big = _reference_forward(z_big, params)
    assert out_big.shape == (300, num_classes)
    assert jnp.allclose(out_big, ref_big, atol=1e-4, rtol=1e-4), "large-batch mismatch"

    # 3) Small-batch auto dispatch takes the XLA fast path; verify parity with the reference.
    out_xla = jax.block_until_ready(cross_subject_classifier_forward(z_small, prepared))
    assert jnp.allclose(out_xla, ref_small, atol=1e-4, rtol=1e-4), "XLA fast-path mismatch"

    print("KERNEL_OK")
</pallas_src>

<mosaic_0001>
module attributes {stable_mosaic.version = 11 : i64} {
  func.func @_csc_kernel(%arg0: i32, %arg1: memref<8x32xf32, #tpu.memory_space<vmem>>, %arg2: memref<32x128xf32, #tpu.memory_space<vmem>>, %arg3: memref<128x128xf32, #tpu.memory_space<vmem>>, %arg4: memref<128x128xf32, #tpu.memory_space<vmem>>, %arg5: memref<8x128xf32, #tpu.memory_space<vmem>>, %arg6: memref<8x8xf32, #tpu.memory_space<vmem>>) attributes {dimension_semantics = [#tpu.dimension_semantics<parallel>], iteration_bounds = array<i64: 1>, scalar_prefetch = 0 : i64, scratch_operands = 0 : i64, tpu.core_type = #tpu.core_type<tc>, window_params = [{transform_indices = @transform_0, window_bounds = array<i64: 8, 32>}, {pipeline_mode = #tpu.pipeline_mode<synchronous>, transform_indices = @transform_1, window_bounds = array<i64: 32, 128>}, {pipeline_mode = #tpu.pipeline_mode<synchronous>, transform_indices = @transform_2, window_bounds = array<i64: 128, 128>}, {pipeline_mode = #tpu.pipeline_mode<synchronous>, transform_indices = @transform_3, window_bounds = array<i64: 128, 128>}, {pipeline_mode = #tpu.pipeline_mode<synchronous>, transform_indices = @transform_4, window_bounds = array<i64: 8, 128>}, {transform_indices = @transform_5, window_bounds = array<i64: 8, 8>}]} {
    %c0 = arith.constant 0 : index
    %c0_0 = arith.constant 0 : index
    %0 = vector.load %arg1[%c0, %c0_0] : memref<8x32xf32, #tpu.memory_space<vmem>>, vector<8x32xf32>
    %c0_1 = arith.constant 0 : index
    %c0_2 = arith.constant 0 : index
    %1 = vector.load %arg2[%c0_1, %c0_2] : memref<32x128xf32, #tpu.memory_space<vmem>>, vector<32x128xf32>
    %cst = arith.constant dense<0.000000e+00> : vector<8x128xf32>
    %2 = tpu.matmul %0, %1, %cst {dimension_numbers = #tpu.dot_dimension_numbers<[1], [0], [0], [1], [0, 0, 1, 1], [], []>} : vector<8x32xf32>, vector<32x128xf32>, vector<8x128xf32> -> vector<8x128xf32>
    %c0_3 = arith.constant 0 : index
    %c0_4 = arith.constant 0 : index
    %3 = vector.load %arg5[%c0_3, %c0_4] : memref<8x128xf32, #tpu.memory_space<vmem>>, vector<1x128xf32>
    %4 = vector.broadcast %3 : vector<1x128xf32> to vector<8x128xf32>
    %5 = arith.addf %2, %4 : vector<8x128xf32>
    %cst_5 = arith.constant 0.000000e+00 : f32
    %6 = vector.broadcast %cst_5 : f32 to vector<8x128xf32>
    %7 = arith.maximumf %5, %6 : vector<8x128xf32>
    %c0_6 = arith.constant 0 : index
    %c0_7 = arith.constant 0 : index
    %8 = vector.load %arg3[%c0_6, %c0_7] : memref<128x128xf32, #tpu.memory_space<vmem>>, vector<128x128xf32>
    %cst_8 = arith.constant dense<0.000000e+00> : vector<8x128xf32>
    %9 = tpu.matmul %7, %8, %cst_8 {dimension_numbers = #tpu.dot_dimension_numbers<[1], [0], [0], [1], [0, 0, 1, 1], [], []>} : vector<8x128xf32>, vector<128x128xf32>, vector<8x128xf32> -> vector<8x128xf32>
    %c1 = arith.constant 1 : index
    %c0_9 = arith.constant 0 : index
    %10 = vector.load %arg5[%c1, %c0_9] : memref<8x128xf32, #tpu.memory_space<vmem>>, vector<1x128xf32>
    %11 = vector.broadcast %10 : vector<1x128xf32> to vector<8x128xf32>
    %12 = arith.addf %9, %11 : vector<8x128xf32>
    %cst_10 = arith.constant 0.000000e+00 : f32
    %13 = vector.broadcast %cst_10 : f32 to vector<8x128xf32>
    %14 = arith.maximumf %12, %13 : vector<8x128xf32>
    %c0_11 = arith.constant 0 : index
    %c0_12 = arith.constant 0 : index
    %15 = vector.load %arg4[%c0_11, %c0_12] : memref<128x128xf32, #tpu.memory_space<vmem>>, vector<128x128xf32>
    %cst_13 = arith.constant dense<0.000000e+00> : vector<8x128xf32>
    %16 = tpu.matmul %14, %15, %cst_13 {dimension_numbers = #tpu.dot_dimension_numbers<[1], [0], [0], [1], [0, 0, 1, 1], [], []>} : vector<8x128xf32>, vector<128x128xf32>, vector<8x128xf32> -> vector<8x128xf32>
    %c2 = arith.constant 2 : index
    %c0_14 = arith.constant 0 : index
    %17 = vector.load %arg5[%c2, %c0_14] : memref<8x128xf32, #tpu.memory_space<vmem>>, vector<1x128xf32>
    %18 = vector.broadcast %17 : vector<1x128xf32> to vector<8x128xf32>
    %19 = arith.addf %16, %18 : vector<8x128xf32>
    %20 = vector.extract_strided_slice %19 {offsets = [0, 0], sizes = [8, 8], strides = [1, 1]} : vector<8x128xf32> to vector<8x8xf32>
    %c0_15 = arith.constant 0 : index
    %c0_16 = arith.constant 0 : index
    %21 = vector.load %arg6[%c0_15, %c0_16] : memref<8x8xf32, #tpu.memory_space<vmem>>, vector<8x8xf32>
    tpu.vector_store %arg6[%c0_15, %c0_16], %20 {strides = array<i32>} : memref<8x8xf32, #tpu.memory_space<vmem>>, vector<8x8xf32>,
    return
  }
  func.func @transform_0(%arg0: i32) -> (i32, i32) {
    %c0_i32 = arith.constant 0 : i32
    %c0_i32_0 = arith.constant 0 : i32
    return %arg0, %c0_i32 : i32, i32
  }
  func.func @transform_1(%arg0: i32) -> (i32, i32) {
    %c0_i32 = arith.constant 0 : i32
    %c0_i32_0 = arith.constant 0 : i32
    %c0_i32_1 = arith.constant 0 : i32
    return %c0_i32, %c0_i32_0 : i32, i32
  }
  func.func @transform_2(%arg0: i32) -> (i32, i32) {
    %c0_i32 = arith.constant 0 : i32
    %c0_i32_0 = arith.constant 0 : i32
    %c0_i32_1 = arith.constant 0 : i32
    return %c0_i32, %c0_i32_0 : i32, i32
  }
  func.func @transform_3(%arg0: i32) -> (i32, i32) {
    %c0_i32 = arith.constant 0 : i32
    %c0_i32_0 = arith.constant 0 : i32
    %c0_i32_1 = arith.constant 0 : i32
    return %c0_i32, %c0_i32_0 : i32, i32
  }
  func.func @transform_4(%arg0: i32) -> (i32, i32) {
    %c0_i32 = arith.constant 0 : i32
    %c0_i32_0 = arith.constant 0 : i32
    %c0_i32_1 = arith.constant 0 : i32
    return %c0_i32, %c0_i32_0 : i32, i32
  }
  func.func @transform_5(%arg0: i32) -> (i32, i32) {
    %c0_i32 = arith.constant 0 : i32
    %c0_i32_0 = arith.constant 0 : i32
    return %arg0, %c0_i32 : i32, i32
  }
}

</mosaic_0001>

<bundles_post_ra>
// kernel: tpu_custom_call.1
= control target key start
LH: loop header
LB: loop body
LE: loop exit
PB: predicated region body
PF: predicated region fallthrough
CT: control target
= control target key end

     0   :  { %10 = vsyncpa [#allocation3], 0  ;;  %s806_s0 = inlined_call_operand.hbm [shape: f32[8,32], index: 0, kind: input, shape index: {}]   ;;  %s807_s1 = inlined_call_operand.hbm [shape: f32[32,128], index: 1, kind: input, shape index: {}]   ;;  %s808_s2 = inlined_call_operand.hbm [shape: f32[128,128], index: 2, kind: input, shape index: {}]   ;;  %s809_s3 = inlined_call_operand.hbm [shape: f32[128,128], index: 3, kind: input, shape index: {}]   ;;  %s810_s4 = inlined_call_operand.vmem [shape: f32[8,128], index: 4, kind: input, shape index: {}]   ;;  %s811_s5 = inlined_call_operand.hbm [shape: f32[8,8], index: 5, kind: output, shape index: {}]  }
   0x1   :  { %11 = vsyncpa [#allocation6], 0 }
   0x2   :  { %12 = vsyncpa [#allocation9], 0 }
   0x3   :  { %13 = vsyncpa [#allocation4], 0  ;;  %s667_s18 = smov [#allocation5]   ;;  %s549_s22 = scalar_lea.hbm %s807_s1, 512 }
   0x4   :  { %s29_s19 = sshll.u32 %s667_s18, 4  ;;  %p550_p0 = scmp.ne.s32.totalorder %s807_s1, %s549_s22  ;;  %s30_s19 = int_to_ptr.vmem [resolvable:$true] %s29_s19 }
   0x5   :  { %p553_p1 = scmp.lt.u32.totalorder %s549_s22, %s807_s1 }
   0x7   :  { %p555_p2 = pnand %p553_p1, %p550_p0 }
   0x9   :  { %558 = shalt.err (!%p555_p2)
}
   0xa   :  { %s559_s27 = scalar_lea.vmem %s30_s19, 512  ;;  %p564_p4 = scmp.lt.s32.totalorder %s30_s19, %s30_s19 }
   0xb   :  { %p560_p3 = scmp.ne.s32.totalorder %s30_s19, %s559_s27  ;;  %p565_p5 = scmp.lt.s32.totalorder %s559_s27, %s559_s27 }
   0xd   :  { %p566_p6 = por %p565_p5, %p564_p4 }
   0xf   :  { %p567_p7 = pnand %p566_p6, %p560_p3 }
  0x11   :  { %570 = shalt.err (!%p567_p7)
}
  0x12   :  { %s668_s28 = smov 128   ;;  %s669_s29 = smov 8  }
  0x13   :  { %35 = dma.hbm_to_vmem [thread:$0]  %s807_s1, 512, %s30_s19, [#allocation6], %s668_s28, %s668_s28, %s669_s29  }
  0x14   :  { %s670_s7 = smov [#allocation2]   ;;  %s671_s9 = smov [#allocation7]  }
  0x15   :  { %s20_s8 = sshll.u32 %s670_s7, 4  ;;  %s41_s10 = sshll.u32 %s671_s9, 4  ;;  %s21_s8 = int_to_ptr.vmem [resolvable:$true] %s20_s8  ;;  %s42_s10 = int_to_ptr.vmem [resolvable:$true] %s41_s10 }
  0x16   :  { %s571_s13 = scalar_lea.hbm %s806_s0, 128 }
  0x17   :  { %p572_p8 = scmp.ne.s32.totalorder %s806_s0, %s571_s13  ;;  %p575_p9 = scmp.lt.u32.totalorder %s571_s13, %s806_s0 }
  0x19   :  { %p577_p10 = pnand %p575_p9, %p572_p8 }
  0x1b   :  { %580 = shalt.err (!%p577_p10)
}
  0x1c   :  { %s581_s1 = scalar_lea.vmem %s21_s8, 128  ;;  %p586_p12 = scmp.lt.s32.totalorder %s21_s8, %s21_s8 }
  0x1d   :  { %p582_p11 = scmp.ne.s32.totalorder %s21_s8, %s581_s1  ;;  %p587_p13 = scmp.lt.s32.totalorder %s581_s1, %s581_s1 }
  0x1f   :  { %p588_p0 = por %p587_p13, %p586_p12 }
  0x21   :  { %p589_p1 = pnand %p588_p0, %p582_p11 }
  0x23   :  { %592 = shalt.err (!%p589_p1)
}
  0x24   :  { %23 = dma.hbm_to_vmem [thread:$0]  %s806_s0, 128, %s21_s8, [#allocation3]  }
  0x25   :  { %s593_s22 = scalar_lea.hbm %s808_s2, 2048 }
  0x26   :  { %p594_p2 = scmp.ne.s32.totalorder %s808_s2, %s593_s22  ;;  %p597_p3 = scmp.lt.u32.totalorder %s593_s22, %s808_s2 }
  0x28   :  { %p599_p4 = pnand %p597_p3, %p594_p2 }
  0x2a   :  { %602 = shalt.err (!%p599_p4)
}
  0x2b   :  { %s603_s27 = scalar_lea.vmem %s42_s10, 2048  ;;  %p608_p6 = scmp.lt.s32.totalorder %s42_s10, %s42_s10 }
  0x2c   :  { %p604_p5 = scmp.ne.s32.totalorder %s42_s10, %s603_s27  ;;  %p609_p7 = scmp.lt.s32.totalorder %s603_s27, %s603_s27 }
  0x2e   :  { %p610_p8 = por %p609_p7, %p608_p6 }
  0x30   :  { %p611_p9 = pnand %p610_p8, %p604_p5 }
  0x32   :  { %614 = shalt.err (!%p611_p9)
}
  0x33   :  { %47 = dma.hbm_to_vmem [thread:$0]  %s808_s2, 2048, %s42_s10, [#allocation6], %s668_s28, %s668_s28, %s669_s29  }
  0x34   :  { %s672_s6 = smov [#allocation8]   ;;  %s615_s11 = scalar_lea.hbm %s809_s3, 2048 }
  0x35   :  { %s53_s7 = sshll.u32 %s672_s6, 4  ;;  %p616_p10 = scmp.ne.s32.totalorder %s809_s3, %s615_s11  ;;  %s54_s7 = int_to_ptr.vmem [resolvable:$true] %s53_s7 }
  0x36   :  { %p619_p11 = scmp.lt.u32.totalorder %s615_s11, %s809_s3 }
  0x38   :  { %p621_p12 = pnand %p619_p11, %p616_p10 }
  0x3a   :  { %624 = shalt.err (!%p621_p12)
}
  0x3b   :  { %s625_s16 = scalar_lea.vmem %s54_s7, 2048  ;;  %p630_p0 = scmp.lt.s32.totalorder %s54_s7, %s54_s7 }
  0x3c   :  { %p626_p13 = scmp.ne.s32.totalorder %s54_s7, %s625_s16  ;;  %p631_p1 = scmp.lt.s32.totalorder %s625_s16, %s625_s16 }
  0x3e   :  { %p632_p2 = por %p631_p1, %p630_p0 }
  0x40   :  { %p633_p3 = pnand %p632_p2, %p626_p13 }
  0x42   :  { %636 = shalt.err (!%p633_p3)
}
  0x43   :  { %59 = dma.hbm_to_vmem [thread:$0]  %s809_s3, 2048, %s54_s7, [#allocation9], %s668_s28, %s668_s28, %s669_s29  }
  0x44   :  { %659 = dma.done.wait [#allocation3], 128  }
  0x45   :  { %660 = vsyncadd [#allocation3], 4294967168 }
  0x46   :  { %661 = dma.done.wait [#allocation6], 2560  }
  0x47   :  { %662 = vsyncadd [#allocation6], 4294964736 }
  0x48   :  { %663 = dma.done.wait [#allocation9], 2048  }
  0x49   :  { %664 = vsyncadd [#allocation9], 4294965248  ;;  %v673_v0 = vmov 0.0|0.0   ;;  %vm674_vm0 = vmmov 0   ;;  %v675_v1 = vmov 0.0   ;;  %v75_v2 = vld [vmem:[#allocation5] sm:$0xff] }
  0x4a   :  { %485 = vmatprep.subr.bf16.mxu0 %v673_v0  ;;  %412 = vmatprep.mubr.msk.f32.mxu0 %vm674_vm0, %v675_v1  ;;  %v76_v3 = vld [vmem:[#allocation5 + $0x8] sm:$0xff]  ;;  %v77_v4 = vld [vmem:[#allocation5 + $0x10] sm:$0xff]  ;;  %v78_v6 = vld [vmem:[#allocation5 + $0x18] sm:$0xff]  ;;  %vm84_vm1 = vcmask 261120   ;;  %s676_s19 = smov [#allocation10]   ;;  %vm342_vm2 = vcmask 64512  }
  0x4b   :  { %491 = vmatprep.subr.bf16.mxu1 %v673_v0  ;;  %447 = vmatprep.mubr.msk.f32.mxu1 %vm674_vm0, %v675_v1  ;;  %v486_v5 = vpack.c.bf16 %v76_v3, %v75_v2  ;;  %v159_v7 = vld [vmem:[#allocation7] sm:$0xff]  ;;  %v160_v8 = vld [vmem:[#allocation7 + $0x8] sm:$0xff]  ;;  %v161_v9 = vld [vmem:[#allocation7 + $0x10] sm:$0xff]  ;;  %v489_v11 = vpack.c.bf16 %v78_v6, %v77_v4  ;;  %s350_s20 = sshll.u32 %s676_s19, 4  ;;  %s351_s20 = int_to_ptr.vmem [resolvable:$true] %s350_s20 }
  0x4c   :  { %v162_v10 = vld [vmem:[#allocation7 + $0x18] sm:$0xff]  ;;  %v492_v12 = vpack.c.bf16 %v160_v8, %v159_v7  ;;  %v163_v14 = vld [vmem:[#allocation7 + $0x20] sm:$0xff]  ;;  %v164_v15 = vld [vmem:[#allocation7 + $0x28] sm:$0xff]  ;;  %s637_s21 = scalar_lea.vmem %s351_s20, 128  ;;  %p642_p5 = scmp.lt.s32.totalorder %s351_s20, %s351_s20 }
  0x4d   :  { %487 = vmatpush3.bf16.msra.mxu0 %v486_v5  ;;  %v495_v13 = vpack.c.bf16 %v162_v10, %v161_v9  ;;  %v74_v16 = vld [vmem:[#allocation2] sm:$0xff]  ;;  %v498_v17 = vpack.c.bf16 %v164_v15, %v163_v14  ;;  %v165_v18 = vld [vmem:[#allocation7 + $0x30] sm:$0xff]  ;;  %v167_v21 = vld [vmem:[#allocation7 + $0x40] sm:$0xff]  ;;  %p638_p4 = scmp.ne.s32.totalorder %s351_s20, %s637_s21  ;;  %p643_p6 = scmp.lt.s32.totalorder %s637_s21, %s637_s21 }
  0x4e   :  { %488 = vmatprep.subr.bf16.mxu0 %v673_v0  ;;  %493 = vmatpush3.bf16.msra.mxu1 %v492_v12  ;;  %v166_v19 = vld [vmem:[#allocation7 + $0x38] sm:$0xff]  ;;  %v168_v22 = vld [vmem:[#allocation7 + $0x48] sm:$0xff]  ;;  %v169_v24 = vld [vmem:[#allocation7 + $0x50] sm:$0xff] }
  0x4f   :  { %494 = vmatprep.subr.bf16.mxu1 %v673_v0  ;;  %v501_v20 = vpack.c.bf16 %v166_v19, %v165_v18  ;;  %v504_v23 = vpack.c.bf16 %v168_v22, %v167_v21  ;;  %v170_v25 = vld [vmem:[#allocation7 + $0x58] sm:$0xff]  ;;  %v171_v27 = vld [vmem:[#allocation7 + $0x60] sm:$0xff]  ;;  %v172_v28 = vld [vmem:[#allocation7 + $0x68] sm:$0xff]  ;;  %p644_p7 = por %p643_p6, %p642_p5 }
  0x50   :  { %v507_v26 = vpack.c.bf16 %v170_v25, %v169_v24  ;;  %v510_v29 = vpack.c.bf16 %v172_v28, %v171_v27  ;;  %v173_v30 = vld [vmem:[#allocation7 + $0x70] sm:$0xff]  ;;  %v174_v31 = vld [vmem:[#allocation7 + $0x78] sm:$0xff]  ;;  %v251_v33 = vld [vmem:[#allocation8] sm:$0xff] }
  0x51   :  { %490 = vmatpush3.bf16.msra.mxu0 %v489_v11  ;;  %v513_v32 = vpack.c.bf16 %v174_v31, %v173_v30  ;;  %v252_v34 = vld [vmem:[#allocation8 + $0x8] sm:$0xff]  ;;  %v253_v35 = vld [vmem:[#allocation8 + $0x10] sm:$0xff]  ;;  %v254_v37 = vld [vmem:[#allocation8 + $0x18] sm:$0xff]  ;;  %p645_p8 = pnand %p644_p7, %p638_p4 }
  0x52   :  { %515 = vmatprep.subr.bf16.mxu0 %v673_v0  ;;  %496 = vmatpush3.bf16.msra.mxu1 %v495_v13  ;;  %v516_v36 = vpack.c.bf16 %v252_v34, %v251_v33  ;;  %v519_v38 = vpack.c.bf16 %v254_v37, %v253_v35  ;;  %v255_v39 = vld [vmem:[#allocation8 + $0x20] sm:$0xff]  ;;  %v256_v40 = vld [vmem:[#allocation8 + $0x28] sm:$0xff]  ;;  %v257_v42 = vld [vmem:[#allocation8 + $0x30] sm:$0xff] }
  0x53   :  { %497 = vmatprep.subr.bf16.mxu1 %v673_v0  ;;  %v522_v41 = vpack.c.bf16 %v256_v40, %v255_v39  ;;  %v258_v43 = vld [vmem:[#allocation8 + $0x38] sm:$0xff]  ;;  %v259_v45 = vld [vmem:[#allocation8 + $0x40] sm:$0xff]  ;;  %v260_v46 = vld [vmem:[#allocation8 + $0x48] sm:$0xff] }
  0x54   :  { %413 = vmatmul.mubr.msk.f32.vlgmr.msra.gmra.mrb[0].mxu0 %vm84_vm1, %v74_v16  ;;  %v525_v44 = vpack.c.bf16 %v258_v43, %v257_v42  ;;  %v528_v47 = vpack.c.bf16 %v260_v46, %v259_v45  ;;  %v261_v48 = vld [vmem:[#allocation8 + $0x50] sm:$0xff]  ;;  %v262_v49 = vld [vmem:[#allocation8 + $0x58] sm:$0xff]  ;;  %v263_v51 = vld [vmem:[#allocation8 + $0x60] sm:$0xff] }
  0x55   :  { %482 = vmatprep.mubr.msk.f32.mxu0 %vm674_vm0, %v675_v1  ;;  %517 = vmatpush3.bf16.msra.mxu0 %v516_v36  ;;  %v531_v50 = vpack.c.bf16 %v262_v49, %v261_v48  ;;  %v264_v52 = vld [vmem:[#allocation8 + $0x68] sm:$0xff]  ;;  %v361_v54 = vld [vmem:[%s810_s4] ss:$0 sm:$0xff]  ;;  %v265_v59 = vld [vmem:[#allocation8 + $0x70] sm:$0xff] }
  0x56   :  { %499 = vmatpush3.bf16.msra.mxu1 %v498_v17  ;;  %518 = vmatprep.subr.bf16.mxu0 %v673_v0  ;;  %v534_v53 = vpack.c.bf16 %v264_v52, %v263_v51  ;;  %v266_v60 = vld [vmem:[#allocation8 + $0x78] sm:$0xff] }
  0x57   :  { %500 = vmatprep.subr.bf16.mxu1 %v673_v0  ;;  %v537_v61 = vpack.c.bf16 %v266_v60, %v265_v59  ;;  %v363_v62 = vld [vmem:[%s810_s4 + $0x1] ss:$0 sm:$0xff]  ;;  %v364_v3 = vld [vmem:[%s810_s4 + $0x2] ss:$0 sm:$0xff] }
  0x59   :  { %520 = vmatpush3.bf16.msra.mxu0 %v519_v38 }
  0x5a   :  { %502 = vmatpush3.bf16.msra.mxu1 %v501_v20  ;;  %521 = vmatprep.subr.bf16.mxu0 %v673_v0 }
  0x5b   :  { %503 = vmatprep.subr.bf16.mxu1 %v673_v0 }
  0x5d   :  { %523 = vmatpush3.bf16.msra.mxu0 %v522_v41 }
  0x5e   :  { %505 = vmatpush3.bf16.msra.mxu1 %v504_v23  ;;  %524 = vmatprep.subr.bf16.mxu0 %v673_v0 }
  0x5f   :  { %506 = vmatprep.subr.bf16.mxu1 %v673_v0 }
  0x61   :  { %526 = vmatpush3.bf16.msra.mxu0 %v525_v44 }
  0x62   :  { %508 = vmatpush3.bf16.msra.mxu1 %v507_v26  ;;  %527 = vmatprep.subr.bf16.mxu0 %v673_v0 }
  0x63   :  { %509 = vmatprep.subr.bf16.mxu1 %v673_v0 }
  0x65   :  { %529 = vmatpush3.bf16.msra.mxu0 %v528_v47 }
  0x66   :  { %511 = vmatpush3.bf16.msra.mxu1 %v510_v29  ;;  %530 = vmatprep.subr.bf16.mxu0 %v673_v0 }
  0x67   :  { %512 = vmatprep.subr.bf16.mxu1 %v673_v0 }
  0x69   :  { %532 = vmatpush3.bf16.msra.mxu0 %v531_v50 }
  0x6a   :  { %514 = vmatpush3.bf16.msra.mxu1 %v513_v32  ;;  %533 = vmatprep.subr.bf16.mxu0 %v673_v0 }
  0x6d   :  { %535 = vmatpush3.bf16.msra.mxu0 %v534_v53 }
  0x6e   :  { %536 = vmatprep.subr.bf16.mxu0 %v673_v0 }
  0x71   :  { %538 = vmatpush3.bf16.msra.mxu0 %v537_v61 }
 0x127   :  { %v154_v55 = vpop.f32.mrb[0].mxu0 }
 0x128   :  { %v155_v56 = vadd.f32 %v361_v54, %v154_v55  ;;  %v414_v57 = vpop.f32.mrb[1].mxu0 }
 0x12a   :  { %v158_v58 = vmax.f32 %v155_v56, 0.0 }
 0x12c   :  { %448 = vmatmul.mubr.f32.vlgmr.msra.gmra.mrb[0].mxu1 %v158_v58 }
 0x1ff   :  { %v246_v63 = vpop.f32.mrb[0].mxu1 }
 0x200   :  { %v247_v1 = vadd.f32 %v363_v62, %v246_v63  ;;  %v449_v0 = vpop.f32.mrb[1].mxu1 }
 0x202   :  { %v250_v2 = vmax.f32 %v247_v1, 0.0 }
 0x204   :  { %483 = vmatmul.mubr.f32.vlgmr.msra.gmra.mrb[2].mxu0 %v250_v2 }
 0x2d7   :  { %v338_v4 = vpop.f32.mrb[2].mxu0 }
 0x2d8   :  { %v339_v5 = vadd.f32 %v364_v3, %v338_v4  ;;  %v484_v6 = vpop.f32.mrb[3].mxu0 }
 0x2da   :  { %343 = vst.msk [vmem:[#allocation10] sm:$0xff] %vm342_vm2, %v339_v5 }
 0x2db   :  { %648 = shalt.err (!%p645_p8)
}
 0x2dc   :  { %s649_s24 = scalar_lea.hbm %s811_s5, 128 }
 0x2dd   :  { %p650_p9 = scmp.ne.s32.totalorder %s811_s5, %s649_s24  ;;  %p653_p10 = scmp.lt.u32.totalorder %s649_s24, %s811_s5 }
 0x2df   :  { %p655_p11 = pnand %p653_p10, %p650_p9 }
 0x2e1   :  { %658 = shalt.err (!%p655_p11)
}
 0x2e2   :  { %353 = dma.vmem_to_hbm [thread:$0]  %s351_s20, 128, %s811_s5, [#allocation4]  }
 0x2e3   :  { %665 = dma.done.wait [#allocation4], 128  }
 0x2e4   :  { %666 = vsyncadd [#allocation4], 4294967168 }
 0x2e5   :  { %357 = vsyncpa [#allocation3], 1 }
 0x2e6   :  { %358 = vsyncpa [#allocation6], 1 }
 0x2e7   :  { %359 = vsyncpa [#allocation9], 1 }
 0x2e8   :  { %360 = vsyncpa [#allocation4], 1 }

</bundles_post_ra>
